<compile_context>
chip_gen: v7x
topology: tpu7x:2x2x1
jax: 0.10.0
libtpu: 0.0.40
codegen_flags: <defaults>
</compile_context>

<pallas_src>
import functools

import jax
import jax.numpy as jnp
from jax import lax
from jax.experimental import pallas as pl
from jax.experimental.pallas import tpu as pltpu

_LANE = 128
_SUBLANE = 8
_SUB_ROWS = 128            # strip-mine granularity: (128,128) f32 = 16 vregs per array
_MAX_TILE_ROWS = 2048      # rows per grid step: 2048*128*4 B = 1 MiB per f32 input block


def _tbce_kernel(p_ref, t_ref, o_ref, acc_ref, *,
                 tile_rows, steps_per_chunk, nblocks,
                 last_full_subs, last_rem, has_dups):
    """Accumulate the BCE log-likelihood of one (tile_rows, 128) block."""
    c = pl.program_id(0)               # chunk axis ("parallel")
    i = pl.program_id(1)               # step within chunk ("arbitrary")
    gb = c * steps_per_chunk + i       # logical block id

    @pl.when(i == 0)
    def _init():
        acc_ref[...] = jnp.zeros_like(acc_ref)

    def accum_sub(row0, valid_rows=None):
        """One (_SUB_ROWS, 128) sub-tile -> (8, 128) accumulator update."""
        p = p_ref[pl.ds(row0, _SUB_ROWS), :].astype(jnp.float32)
        t = t_ref[pl.ds(row0, _SUB_ROWS), :].astype(jnp.float32)
        # PyTorch BCELoss clamps both log terms at -100 for stability.
        log_p = jnp.maximum(jnp.log(p), jnp.float32(-100.0))
        log_1mp = jnp.maximum(jnp.log(1.0 - p), jnp.float32(-100.0))
        # Log-likelihood (<= 0); 3 VALU ops/elem, negation hoisted to finalize.
        ll = t * (log_p - log_1mp) + log_1mp
        if valid_rows is not None:
            # Row-only mask (numel is always a multiple of 128 here); only the
            # single ragged sub-tile of the last real block ever pays this.
            row = lax.broadcasted_iota(jnp.int32, (_SUB_ROWS, _LANE), 0)
            ll = jnp.where(row < valid_rows, ll, jnp.float32(0.0))
        # Collapse _SUB_ROWS -> 8 sublanes with pure vreg adds (no XLU per sub-tile).
        acc_ref[...] += ll.reshape(_SUB_ROWS // _SUBLANE, _SUBLANE, _LANE).sum(axis=0)

    def accum_full_subs(n_subs):
        if n_subs <= 0:
            return
        if n_subs == 1:
            accum_sub(0)
            return

        def body(r, carry):
            accum_sub(pl.multiple_of(r * _SUB_ROWS, _SUB_ROWS))
            return carry

        lax.fori_loop(0, n_subs, body, 0)

    n_full_subs = tile_rows // _SUB_ROWS
    last_is_full = (last_full_subs == n_full_subs) and (last_rem == 0)

    if last_is_full and not has_dups:
        # Every grid step is a real, full block: no predication, no mask.
        accum_full_subs(n_full_subs)
    elif last_is_full:
        @pl.when(gb < nblocks)          # skip clamped duplicate blocks entirely
        def _real_blocks():
            accum_full_subs(n_full_subs)
    else:
        if nblocks > 1:
            @pl.when(gb < nblocks - 1)  # full real blocks: mask-free path
            def _full_blocks():
                accum_full_subs(n_full_subs)

        @pl.when(gb == nblocks - 1)     # last (partial) real block
        def _last_block():
            accum_full_subs(last_full_subs)
            if last_rem:
                accum_sub(last_full_subs * _SUB_ROWS, valid_rows=last_rem)

    @pl.when(i == steps_per_chunk - 1)
    def _finalize():
        # Sublane-collapse + hoisted negation; one (1, 1, 128) row per chunk.
        o_ref[...] = (-jnp.sum(acc_ref[...], axis=0, keepdims=True))[None]


def _in_index_map(c, i, *, steps_per_chunk, nblocks):
    # Clamp over-covering grid steps onto the last real block; their compute is
    # skipped inside the kernel (only one wasted block DMA per duplicate).
    return jnp.minimum(c * steps_per_chunk + i, nblocks - 1), 0


@jax.jit
def tbce_loss(pred_probs, truths):
    """Equivalent of TBCELoss()(pred, truths): sum of elementwise BCE.

    Note: despite the original PyTorch argument name `pred_logits`, BCELoss
    expects probabilities in (0, 1) -- hence `pred_probs` here.
    """
    n = pred_probs.size
    p_flat = pred_probs.reshape(-1)
    t_flat = truths.reshape(-1)

    rem = n % _LANE
    if rem:
        # TODO(synk): a truly copy-free ragged path needs 1-D / manual-DMA
        # blocks; for numel % 128 != 0 we still pad the flat arrays (only to
        # the next multiple of 128) with loss-neutral (p=1, t=1) values.
        pad = _LANE - rem
        p_flat = jnp.pad(p_flat, (0, pad), constant_values=1)
        t_flat = jnp.pad(t_flat, (0, pad), constant_values=1)

    rows = p_flat.size // _LANE
    p2d = p_flat.reshape(rows, _LANE)   # free: row-major bitcast, no HBM copy
    t2d = t_flat.reshape(rows, _LANE)

    # Block geometry (all static under jit).
    tile_rows = min(_MAX_TILE_ROWS, pl.cdiv(rows, _SUB_ROWS) * _SUB_ROWS)
    nblocks = pl.cdiv(rows, tile_rows)
    last_rows = rows - (nblocks - 1) * tile_rows       # 1..tile_rows valid rows
    last_full_subs = last_rows // _SUB_ROWS
    last_rem = last_rows % _SUB_ROWS

    # Two "parallel" chunks let megacore chips split the grid across their
    # TensorCores; near-neutral on single-core v5e/v6e.
    # TODO(synk): switch to pltpu.CORE_PARALLEL / pl.core_map on v7x once the
    # chip generation can be detected robustly without risking other targets.
    num_chunks = 2 if nblocks >= 2 else 1
    steps_per_chunk = pl.cdiv(nblocks, num_chunks)
    has_dups = num_chunks * steps_per_chunk != nblocks

    kernel = functools.partial(
        _tbce_kernel,
        tile_rows=tile_rows,
        steps_per_chunk=steps_per_chunk,
        nblocks=nblocks,
        last_full_subs=last_full_subs,
        last_rem=last_rem,
        has_dups=has_dups,
    )
    in_map = functools.partial(
        _in_index_map, steps_per_chunk=steps_per_chunk, nblocks=nblocks)

    partials = pl.pallas_call(
        kernel,
        out_shape=jax.ShapeDtypeStruct((num_chunks, 1, _LANE), jnp.float32),
        grid_spec=pltpu.PrefetchScalarGridSpec(
            num_scalar_prefetch=0,
            grid=(num_chunks, steps_per_chunk),
            in_specs=[
                pl.BlockSpec((tile_rows, _LANE), in_map),
                pl.BlockSpec((tile_rows, _LANE), in_map),
            ],
            out_specs=pl.BlockSpec((1, 1, _LANE), lambda c, i: (c, 0, 0)),
            scratch_shapes=[pltpu.VMEM((_SUBLANE, _LANE), jnp.float32)],
        ),
        compiler_params=pltpu.CompilerParams(
            dimension_semantics=("parallel", "arbitrary")),
    )(p2d, t2d)

    # Tiny (<= 2, 1, 128) partial-sum reduction outside the kernel.
    return jnp.sum(partials)


def _reference(pred, truths):
    """Pure-JAX reference mirroring torch.nn.BCELoss(reduction='none').sum()."""
    t = truths.astype(jnp.float32)
    p = pred.astype(jnp.float32)
    log_p = jnp.maximum(jnp.log(p), -100.0)
    log_1mp = jnp.maximum(jnp.log(1.0 - p), -100.0)
    return jnp.sum(-(t * log_p + (1.0 - t) * log_1mp))


def _check(shape, key, pred_dtype=jnp.float32):
    k1, k2 = jax.random.split(key)
    # BCELoss expects probabilities in (0, 1): squash with sigmoid.
    pred = jax.nn.sigmoid(jax.random.normal(k1, shape, dtype=jnp.float32))
    pred = pred.astype(pred_dtype)
    truths = (jax.random.uniform(k2, shape) > 0.5).astype(jnp.float32)

    out = tbce_loss(pred, truths)
    jax.block_until_ready(out)
    ref = _reference(pred, truths)
    assert jnp.allclose(out, ref, rtol=1e-4, atol=1e-2), (shape, out, ref)


if __name__ == "__main__":
    key = jax.random.PRNGKey(0)
    ks = jax.random.split(key, 5)

    # Small NCHW case: numel % 128 == 0 -> zero-copy path, single partial block,
    # single masked sub-tile.
    _check((2, 4, 16, 16), ks[0])
    # Ragged numel (not a multiple of 128): minimal tail pad + masked sub-tile
    # + strip-mined fori_loop over the last block.
    _check((3, 4, 110, 100), ks[1])
    # bf16 probabilities stream as bf16 in HBM; f32 upcast happens in-kernel.
    _check((2, 4, 16, 16), ks[2], pred_dtype=jnp.bfloat16)
    # Two full 2048-row blocks: exercises the 2-chunk "parallel" axis and the
    # fully unpredicated, mask-free fast path.
    _check((8, 4, 128, 128), ks[3])
    # Three blocks over two chunks: exercises clamped-duplicate-block skipping.
    _check((12, 4, 128, 128), ks[4])

    print("KERNEL_OK")
</pallas_src>

<mosaic_0001>
module attributes {stable_mosaic.version = 11 : i64} {
  func.func @_tbce_kernel(%arg0: i32, %arg1: i32, %arg2: memref<128x128xf32, #tpu.memory_space<vmem>>, %arg3: memref<128x128xf32, #tpu.memory_space<vmem>>, %arg4: memref<1x1x128xf32, #tpu.memory_space<vmem>>, %arg5: memref<8x128xf32, #tpu.memory_space<vmem>>) attributes {dimension_semantics = [#tpu.dimension_semantics<parallel>, #tpu.dimension_semantics<arbitrary>], iteration_bounds = array<i64: 1, 1>, scalar_prefetch = 0 : i64, scratch_operands = 1 : i64, tpu.core_type = #tpu.core_type<tc>, window_params = [{transform_indices = @transform_0, window_bounds = array<i64: 128, 128>}, {transform_indices = @transform_1, window_bounds = array<i64: 128, 128>}, {transform_indices = @transform_2, window_bounds = array<i64: 1, 1, 128>}]} {
    %c1_i32 = arith.constant 1 : i32
    %0 = arith.muli %arg0, %c1_i32 : i32
    %1 = arith.addi %0, %arg1 : i32
    %c0_i32 = arith.constant 0 : i32
    %2 = arith.cmpi eq, %arg1, %c0_i32 : i32
    %3 = arith.extui %2 : i1 to i32
    %c0_i32_0 = arith.constant 0 : i32
    %4 = arith.cmpi ne, %3, %c0_i32_0 : i32
    scf.if %4 {
      %cst = arith.constant 0.000000e+00 : f32
      %11 = vector.broadcast %cst : f32 to vector<8x128xf32>
      %c0 = arith.constant 0 : index
      %c0_5 = arith.constant 0 : index
      %12 = vector.load %arg5[%c0, %c0_5] : memref<8x128xf32, #tpu.memory_space<vmem>>, vector<8x128xf32>
      tpu.vector_store %arg5[%c0, %c0_5], %11 {strides = array<i32>} : memref<8x128xf32, #tpu.memory_space<vmem>>, vector<8x128xf32>,
    } else {
    }
    %c0_i32_1 = arith.constant 0 : i32
    %5 = arith.cmpi eq, %1, %c0_i32_1 : i32
    %6 = arith.extui %5 : i1 to i32
    %c0_i32_2 = arith.constant 0 : i32
    %7 = arith.cmpi ne, %6, %c0_i32_2 : i32
    scf.if %7 {
      %c0 = arith.constant 0 : index
      %c0_5 = arith.constant 0 : index
      %11 = vector.load %arg2[%c0, %c0_5] : memref<128x128xf32, #tpu.memory_space<vmem>>, vector<128x128xf32>
      %c0_6 = arith.constant 0 : index
      %c0_7 = arith.constant 0 : index
      %12 = vector.load %arg3[%c0_6, %c0_7] : memref<128x128xf32, #tpu.memory_space<vmem>>, vector<128x128xf32>
      %13 = math.log %11 : vector<128x128xf32>
      %cst = arith.constant -1.000000e+02 : f32
      %14 = vector.broadcast %cst : f32 to vector<128x128xf32>
      %15 = arith.maximumf %13, %14 : vector<128x128xf32>
      %cst_8 = arith.constant 1.000000e+00 : f32
      %16 = vector.broadcast %cst_8 : f32 to vector<128x128xf32>
      %17 = arith.subf %16, %11 : vector<128x128xf32>
      %18 = math.log %17 : vector<128x128xf32>
      %cst_9 = arith.constant -1.000000e+02 : f32
      %19 = vector.broadcast %cst_9 : f32 to vector<128x128xf32>
      %20 = arith.maximumf %18, %19 : vector<128x128xf32>
      %21 = arith.subf %15, %20 : vector<128x128xf32>
      %22 = arith.mulf %12, %21 : vector<128x128xf32>
      %23 = arith.addf %22, %20 : vector<128x128xf32>
      %24 = tpu.iota {dimensions = array<i32: 0>} : vector<128x128xi32>
      %c16_i32 = arith.constant 16 : i32
      %25 = vector.broadcast %c16_i32 : i32 to vector<128x128xi32>
      %26 = arith.cmpi slt, %24, %25 : vector<128x128xi32>
      %cst_10 = arith.constant 0.000000e+00 : f32
      %27 = vector.broadcast %cst_10 : f32 to vector<128x128xf32>
      %28 = arith.select %26, %23, %27 : vector<128x128xi1>, vector<128x128xf32>
      %c0_11 = arith.constant 0 : index
      %c0_12 = arith.constant 0 : index
      %29 = vector.load %arg5[%c0_11, %c0_12] : memref<8x128xf32, #tpu.memory_space<vmem>>, vector<8x128xf32>
      %30 = vector.shape_cast %28 : vector<128x128xf32> to vector<16x8x128xf32>
      %cst_13 = arith.constant dense<0.000000e+00> : vector<8x128xf32>
      %31 = vector.multi_reduction <add>, %30, %cst_13 [0] : vector<16x8x128xf32> to vector<8x128xf32>
      %32 = arith.addf %29, %31 : vector<8x128xf32>
      %c0_14 = arith.constant 0 : index
      %c0_15 = arith.constant 0 : index
      %33 = vector.load %arg5[%c0_14, %c0_15] : memref<8x128xf32, #tpu.memory_space<vmem>>, vector<8x128xf32>
      tpu.vector_store %arg5[%c0_14, %c0_15], %32 {strides = array<i32>} : memref<8x128xf32, #tpu.memory_space<vmem>>, vector<8x128xf32>,
    } else {
    }
    %c0_i32_3 = arith.constant 0 : i32
    %8 = arith.cmpi eq, %arg1, %c0_i32_3 : i32
    %9 = arith.extui %8 : i1 to i32
    %c0_i32_4 = arith.constant 0 : i32
    %10 = arith.cmpi ne, %9, %c0_i32_4 : i32
    scf.if %10 {
      %c0 = arith.constant 0 : index
      %c0_5 = arith.constant 0 : index
      %11 = vector.load %arg5[%c0, %c0_5] : memref<8x128xf32, #tpu.memory_space<vmem>>, vector<8x128xf32>
      %cst = arith.constant dense<0.000000e+00> : vector<128xf32>
      %12 = vector.multi_reduction <add>, %11, %cst [0] : vector<8x128xf32> to vector<128xf32>
      %13 = vector.shape_cast %12 : vector<128xf32> to vector<1x128xf32>
      %cst_6 = arith.constant 0.000000e+00 : f32
      %14 = vector.broadcast %cst_6 : f32 to vector<1x128xf32>
      %15 = arith.subf %14, %13 : vector<1x128xf32>
      %16 = vector.shape_cast %15 : vector<1x128xf32> to vector<1x1x128xf32>
      %c0_7 = arith.constant 0 : index
      %c0_8 = arith.constant 0 : index
      %c0_9 = arith.constant 0 : index
      %17 = vector.load %arg4[%c0_7, %c0_8, %c0_9] : memref<1x1x128xf32, #tpu.memory_space<vmem>>, vector<1x1x128xf32>
      tpu.vector_store %arg4[%c0_7, %c0_8, %c0_9], %16 {strides = array<i32>} : memref<1x1x128xf32, #tpu.memory_space<vmem>>, vector<1x1x128xf32>,
    } else {
    }
    return
  }
  func.func @transform_0(%arg0: i32, %arg1: i32) -> (i32, i32) {
    %c1_i32 = arith.constant 1 : i32
    %0 = arith.muli %arg0, %c1_i32 : i32
    %1 = arith.addi %0, %arg1 : i32
    %c0_i32 = arith.constant 0 : i32
    %2 = arith.minsi %1, %c0_i32 : i32
    %c0_i32_0 = arith.constant 0 : i32
    %c0_i32_1 = arith.constant 0 : i32
    return %2, %c0_i32_0 : i32, i32
  }
  func.func @transform_1(%arg0: i32, %arg1: i32) -> (i32, i32) {
    %c1_i32 = arith.constant 1 : i32
    %0 = arith.muli %arg0, %c1_i32 : i32
    %1 = arith.addi %0, %arg1 : i32
    %c0_i32 = arith.constant 0 : i32
    %2 = arith.minsi %1, %c0_i32 : i32
    %c0_i32_0 = arith.constant 0 : i32
    %c0_i32_1 = arith.constant 0 : i32
    return %2, %c0_i32_0 : i32, i32
  }
  func.func @transform_2(%arg0: i32, %arg1: i32) -> (i32, i32, i32) {
    %c0_i32 = arith.constant 0 : i32
    %c0_i32_0 = arith.constant 0 : i32
    %c0_i32_1 = arith.constant 0 : i32
    return %arg0, %c0_i32, %c0_i32_0 : i32, i32, i32
  }
}

</mosaic_0001>

<bundles_post_ra>
// kernel: tbce_loss.1
= control target key start
LH: loop header
LB: loop body
LE: loop exit
PB: predicated region body
PF: predicated region fallthrough
CT: control target
= control target key end

     0   :  { %s430_s0 = inlined_call_operand.vmem [shape: f32[16,128], index: 0, kind: input, shape index: {}]   ;;  %s431_s1 = inlined_call_operand.vmem [shape: f32[16,128], index: 1, kind: input, shape index: {}]   ;;  %s432_s2 = inlined_call_operand.vmem [shape: f32[1,1,128], index: 2, kind: output, shape index: {}]  }
   0x1   :  { %v105_v0 = vld [vmem:[%s430_s0] sm:$0xff]  ;;  %v106_v1 = vld [vmem:[%s430_s0 + $0x8] sm:$0xff] }
   0x2   :  { %392 = vlog2.f32 %v105_v0  ;;  %v185_v2 = vsub.f32 1.0, %v105_v0  ;;  %v186_v3 = vsub.f32 1.0, %v106_v1  ;;  %v121_v15 = vld [vmem:[%s431_s1] sm:$0xff]  ;;  %v122_v17 = vld [vmem:[%s431_s1 + $0x8] sm:$0xff] }
   0x3   :  { %394 = vlog2.f32 %v106_v1 }
   0x4   :  { %396 = vlog2.f32 %v185_v2 }
   0x5   :  { %398 = vlog2.f32 %v186_v3 }
   0xc   :  { %v393_v4 = vpop.eup %392 }
   0xd   :  { %v395_v5 = vpop.eup %394  ;;  %v138_v6 = vmul.f32 0.6931472, %v393_v4 }
   0xe   :  { %v397_v7 = vpop.eup %396  ;;  %v140_v8 = vmul.f32 0.6931472, %v395_v5 }
   0xf   :  { %v399_v9 = vpop.eup %398  ;;  %v169_v10 = vmax.f32 %v138_v6, -100.0  ;;  %v202_v11 = vmul.f32 0.6931472, %v397_v7 }
  0x10   :  { %v170_v12 = vmax.f32 %v140_v8, -100.0  ;;  %v204_v13 = vmul.f32 0.6931472, %v399_v9 }
  0x11   :  { %v233_v14 = vmax.f32 %v202_v11, -100.0 }
  0x12   :  { %v234_v16 = vmax.f32 %v204_v13, -100.0 }
  0x13   :  { %v249_v18 = vsub.f32 %v169_v10, %v233_v14 }
  0x14   :  { %v250_v19 = vsub.f32 %v170_v12, %v234_v16 }
  0x15   :  { %v265_v20 = vmul.f32 %v249_v18, %v121_v15 }
  0x16   :  { %v266_v21 = vmul.f32 %v250_v19, %v122_v17 }
  0x17   :  { %v281_v22 = vadd.f32 %v265_v20, %v233_v14 }
  0x18   :  { %v282_v23 = vadd.f32 %v266_v21, %v234_v16 }
  0x1a   :  { %v347_v24 = vadd.f32 %v282_v23, %v281_v22 }
  0x1c   :  { %v368_v25 = vrot.slane %v347_v24, 4 }
  0x1e   :  { %v369_v26 = vadd.f32 %v368_v25, %v347_v24 }
  0x20   :  { %v370_v27 = vrot.slane %v369_v26, 2 }
  0x22   :  { %v371_v28 = vadd.f32 %v370_v27, %v369_v26 }
  0x24   :  { %v372_v29 = vrot.slane %v371_v28, 1 }
  0x26   :  { %v373_v30 = vadd.f32 %v372_v29, %v371_v28 }
  0x28   :  { %v374_v31 = vsub.f32 0.0, %v373_v30 }
  0x2a   :  { %375 = vst [vmem:[%s432_s2] sm:$0x1] %v374_v31 }

</bundles_post_ra>
